<compile_context>
chip_gen: v7x
topology: tpu7x:2x2x1
jax: 0.10.0
libtpu: 0.0.40
codegen_flags: <defaults>
</compile_context>

<pallas_src>
import math

import jax
import jax.numpy as jnp
from jax.experimental import pallas as pl
from jax.experimental.pallas import tpu as pltpu


def _bce_elementwise_kernel(out_ref, tgt_ref, loss_ref):
    """Per-element BCE: -(t*log(o) + (1-t)*log1p(-o)), logs clamped at -100.

    Matches torch.nn.BCELoss(reduction='none').  Compute in f32 regardless of
    input dtype (v5e has no bf16 VPU/EUP; f32 also preserves torch parity).
    """
    o = out_ref[...].astype(jnp.float32)
    t = tgt_ref[...].astype(jnp.float32)
    # PyTorch clamps log outputs at -100 to avoid -inf.
    log_o = jnp.maximum(jnp.log(o), -100.0)
    log_1mo = jnp.maximum(jnp.log1p(-o), -100.0)
    loss_ref[...] = -(t * log_o + (1.0 - t) * log_1mo)


def _choose_tile_r(rows, lane, dtype_bytes, *, max_block_bytes=2 << 20, min_grid=8):
    """Pick a row-tile size.

    Large enough to amortize per-grid-step overhead, small enough that the
    double-buffered VMEM footprint (3 arrays x 2 buffers x block) stays well
    under every generation's scoped-VMEM budget, and — when the problem is
    big enough — leaving >= min_grid parallel steps so v7x's 2 TensorCores
    can both be fed via dimension_semantics=("parallel",).
    """
    max_r = max(8, ((max_block_bytes // (lane * dtype_bytes)) // 8) * 8)
    if rows <= 8:
        return rows                       # tiny input: one full-extent block
    if rows <= max_r and rows <= 8 * min_grid:
        return min(rows, max_r)           # small input: few steps, small block
    want = -(-rows // min_grid)           # cdiv(rows, min_grid)
    want = max(8, ((want + 7) // 8) * 8)  # multiple of 8 (sublane constraint)
    return min(max_r, want)


def bce_none_pallas(output, target):
    """BCELoss(reduction='none') computed in a Pallas TPU kernel.

    output, target: float32 or bfloat16 arrays of identical (arbitrary) shape,
    values in [0, 1].  Returns float32 per-element loss with the same shape.
    """
    assert output.shape == target.shape, "output/target shape mismatch"
    orig_shape = output.shape
    n = int(math.prod(orig_shape))

    flat_o = output.reshape(-1)
    flat_t = target.reshape(-1)

    # Lane-dense repack: last dim a (large) multiple of 128 -> unmasked stores.
    lane = max(128, min(1024, ((n + 127) // 128) * 128))
    rows = pl.cdiv(n, lane)
    itemsize = jnp.dtype(output.dtype).itemsize
    tile_r = _choose_tile_r(rows, lane, itemsize)
    grid_r = pl.cdiv(rows, tile_r)
    rows_pad = grid_r * tile_r
    total_pad = rows_pad * lane

    pad = total_pad - n
    if pad:
        # Safe pad values: output at 0.5 keeps the padded lanes finite;
        # the padded region is sliced off below anyway.
        flat_o = jnp.pad(flat_o, (0, pad), constant_values=0.5)
        flat_t = jnp.pad(flat_t, (0, pad), constant_values=0.0)

    o2 = flat_o.reshape(rows_pad, lane)
    t2 = flat_t.reshape(rows_pad, lane)

    spec = pl.BlockSpec((tile_r, lane), lambda i: (i, 0))

    loss2 = pl.pallas_call(
        _bce_elementwise_kernel,
        out_shape=jax.ShapeDtypeStruct((rows_pad, lane), jnp.float32),
        grid_spec=pltpu.PrefetchScalarGridSpec(
            num_scalar_prefetch=0,
            grid=(grid_r,),
            in_specs=[spec, spec],
            out_specs=spec,
        ),
        compiler_params=pltpu.CompilerParams(
            dimension_semantics=("parallel",),
            # Lift the scoped-VMEM default (16 MiB v5e / 32 MiB v6e,v7x) so the
            # large double-buffered blocks are never rejected or shrunk; the
            # tile cap above keeps actual usage ~12 MiB, safe on every gen.
            vmem_limit_bytes=32 << 20,
        ),
    )(o2, t2)

    return loss2.reshape(-1)[:n].reshape(orig_shape)


def group_dro_loss_forward(output, target):
    """Forward of GroupDroLoss.

    The reference forward() is `pass`; the module's only defined compute is
    self.xent_criterion = BCELoss(reduction='none').  We expose that
    per-element loss (computed in the Pallas kernel).
    """
    return bce_none_pallas(output, target)


def _reference_bce_none(output, target):
    """Pure-JAX reference (same math as torch BCELoss reduction='none')."""
    log_o = jnp.maximum(jnp.log(output), -100.0)
    log_1mo = jnp.maximum(jnp.log1p(-output), -100.0)
    return -(target * log_o + (1.0 - target) * log_1mo)


if __name__ == "__main__":
    key = jax.random.PRNGKey(0)
    k1, k2 = jax.random.split(key)

    # Small NCHW-style shape (batch=2, channels=4, spatial=16x16); the wrapper
    # flattens/repacks internally, so arbitrary ranks are supported.
    shape = (2, 4, 16, 16)
    # BCE inputs must be probabilities in [0, 1]; keep strictly inside (0, 1)
    # so the reference comparison is well-conditioned.
    output = jax.random.uniform(k1, shape, jnp.float32, minval=1e-3, maxval=1.0 - 1e-3)
    target = jax.random.uniform(k2, shape, jnp.float32, minval=0.0, maxval=1.0)

    loss = group_dro_loss_forward(output, target)
    loss = jax.block_until_ready(loss)

    ref = _reference_bce_none(output, target)
    assert loss.shape == shape
    assert jnp.allclose(loss, ref, atol=1e-5, rtol=1e-5), "mismatch vs reference"

    # Also exercise the tail-padding / multi-step-grid path with an awkward,
    # non-multiple size to confirm the no-assert tiling works.
    k3, k4 = jax.random.split(k1)
    odd_shape = (3, 5, 7, 11)  # 1155 elements, not a multiple of 128
    out2 = jax.random.uniform(k3, odd_shape, jnp.float32, minval=1e-3, maxval=1.0 - 1e-3)
    tgt2 = jax.random.uniform(k4, odd_shape, jnp.float32, minval=0.0, maxval=1.0)
    loss2 = jax.block_until_ready(group_dro_loss_forward(out2, tgt2))
    ref2 = _reference_bce_none(out2, tgt2)
    assert loss2.shape == odd_shape
    assert jnp.allclose(loss2, ref2, atol=1e-5, rtol=1e-5), "mismatch vs reference (odd shape)"

    # And a bf16-input path (upcast inside the kernel, f32 out).
    out3 = output.astype(jnp.bfloat16)
    tgt3 = target.astype(jnp.bfloat16)
    loss3 = jax.block_until_ready(group_dro_loss_forward(out3, tgt3))
    ref3 = _reference_bce_none(out3.astype(jnp.float32), tgt3.astype(jnp.float32))
    assert loss3.dtype == jnp.float32
    assert jnp.allclose(loss3, ref3, atol=1e-4, rtol=1e-4), "mismatch vs reference (bf16)"

    print("KERNEL_OK")
</pallas_src>

<mosaic_0001>
module attributes {stable_mosaic.version = 11 : i64} {
  func.func @_bce_elementwise_kernel(%arg0: i32, %arg1: memref<2x1024xf32, #tpu.memory_space<vmem>>, %arg2: memref<2x1024xf32, #tpu.memory_space<vmem>>, %arg3: memref<2x1024xf32, #tpu.memory_space<vmem>>) attributes {dimension_semantics = [#tpu.dimension_semantics<parallel>], iteration_bounds = array<i64: 1>, scalar_prefetch = 0 : i64, scratch_operands = 0 : i64, tpu.core_type = #tpu.core_type<tc>, window_params = [{transform_indices = @transform_0, window_bounds = array<i64: 2, 1024>}, {transform_indices = @transform_1, window_bounds = array<i64: 2, 1024>}, {transform_indices = @transform_2, window_bounds = array<i64: 2, 1024>}]} {
    %c0 = arith.constant 0 : index
    %c0_0 = arith.constant 0 : index
    %0 = vector.load %arg1[%c0, %c0_0] : memref<2x1024xf32, #tpu.memory_space<vmem>>, vector<2x1024xf32>
    %c0_1 = arith.constant 0 : index
    %c0_2 = arith.constant 0 : index
    %1 = vector.load %arg2[%c0_1, %c0_2] : memref<2x1024xf32, #tpu.memory_space<vmem>>, vector<2x1024xf32>
    %2 = math.log %0 : vector<2x1024xf32>
    %cst = arith.constant -1.000000e+02 : f32
    %3 = vector.broadcast %cst : f32 to vector<2x1024xf32>
    %4 = arith.maximumf %2, %3 : vector<2x1024xf32>
    %cst_3 = arith.constant 0.000000e+00 : f32
    %5 = vector.broadcast %cst_3 : f32 to vector<2x1024xf32>
    %6 = arith.subf %5, %0 : vector<2x1024xf32>
    %7 = math.log1p %6 : vector<2x1024xf32>
    %cst_4 = arith.constant -1.000000e+02 : f32
    %8 = vector.broadcast %cst_4 : f32 to vector<2x1024xf32>
    %9 = arith.maximumf %7, %8 : vector<2x1024xf32>
    %10 = arith.mulf %1, %4 : vector<2x1024xf32>
    %cst_5 = arith.constant 1.000000e+00 : f32
    %11 = vector.broadcast %cst_5 : f32 to vector<2x1024xf32>
    %12 = arith.subf %11, %1 : vector<2x1024xf32>
    %13 = arith.mulf %12, %9 : vector<2x1024xf32>
    %14 = arith.addf %10, %13 : vector<2x1024xf32>
    %cst_6 = arith.constant 0.000000e+00 : f32
    %15 = vector.broadcast %cst_6 : f32 to vector<2x1024xf32>
    %16 = arith.subf %15, %14 : vector<2x1024xf32>
    %c0_7 = arith.constant 0 : index
    %c0_8 = arith.constant 0 : index
    %17 = vector.load %arg3[%c0_7, %c0_8] : memref<2x1024xf32, #tpu.memory_space<vmem>>, vector<2x1024xf32>
    tpu.vector_store %arg3[%c0_7, %c0_8], %16 {strides = array<i32>} : memref<2x1024xf32, #tpu.memory_space<vmem>>, vector<2x1024xf32>,
    return
  }
  func.func @transform_0(%arg0: i32) -> (i32, i32) {
    %c0_i32 = arith.constant 0 : i32
    %c0_i32_0 = arith.constant 0 : i32
    return %arg0, %c0_i32 : i32, i32
  }
  func.func @transform_1(%arg0: i32) -> (i32, i32) {
    %c0_i32 = arith.constant 0 : i32
    %c0_i32_0 = arith.constant 0 : i32
    return %arg0, %c0_i32 : i32, i32
  }
  func.func @transform_2(%arg0: i32) -> (i32, i32) {
    %c0_i32 = arith.constant 0 : i32
    %c0_i32_0 = arith.constant 0 : i32
    return %arg0, %c0_i32 : i32, i32
  }
}

</mosaic_0001>

<bundles_post_ra>
// kernel: tpu_custom_call.1
= control target key start
LH: loop header
LB: loop body
LE: loop exit
PB: predicated region body
PF: predicated region fallthrough
CT: control target
= control target key end

     0   :  { %7 = vsyncpa [#allocation3], 0  ;;  %s233_s0 = inlined_call_operand.hbm [shape: f32[2,1024], index: 0, kind: input, shape index: {}]   ;;  %s234_s1 = inlined_call_operand.hbm [shape: f32[2,1024], index: 1, kind: input, shape index: {}]   ;;  %s235_s2 = inlined_call_operand.hbm [shape: f32[2,1024], index: 2, kind: output, shape index: {}]  }
   0x1   :  { %8 = vsyncpa [#allocation6], 0 }
   0x2   :  { %9 = vsyncpa [#allocation4], 0  ;;  %s179_s9 = smov [#allocation2]   ;;  %s180_s11 = smov [#allocation5]  }
   0x3   :  { %s16_s10 = sshll.u32 %s179_s9, 4  ;;  %s26_s12 = sshll.u32 %s180_s11, 4  ;;  %s17_s10 = int_to_ptr.vmem [resolvable:$true] %s16_s10  ;;  %s27_s12 = int_to_ptr.vmem [resolvable:$true] %s26_s12 }
   0x4   :  { %s107_s15 = scalar_lea.hbm %s233_s0, 256 }
   0x5   :  { %p108_p0 = scmp.ne.s32.totalorder %s233_s0, %s107_s15  ;;  %p111_p1 = scmp.lt.u32.totalorder %s107_s15, %s233_s0 }
   0x7   :  { %p113_p2 = pnand %p111_p1, %p108_p0 }
   0x9   :  { %116 = shalt.err (!%p113_p2)
}
   0xa   :  { %s117_s20 = scalar_lea.vmem %s17_s10, 256  ;;  %p122_p4 = scmp.lt.s32.totalorder %s17_s10, %s17_s10 }
   0xb   :  { %p118_p3 = scmp.ne.s32.totalorder %s17_s10, %s117_s20  ;;  %p123_p5 = scmp.lt.s32.totalorder %s117_s20, %s117_s20 }
   0xd   :  { %p124_p6 = por %p123_p5, %p122_p4 }
   0xf   :  { %p125_p7 = pnand %p124_p6, %p118_p3 }
  0x11   :  { %128 = shalt.err (!%p125_p7)
}
  0x12   :  { %19 = dma.hbm_to_vmem [thread:$0]  %s233_s0, 256, %s17_s10, [#allocation3]  }
  0x13   :  { %s129_s25 = scalar_lea.hbm %s234_s1, 256 }
  0x14   :  { %p130_p8 = scmp.ne.s32.totalorder %s234_s1, %s129_s25  ;;  %p133_p9 = scmp.lt.u32.totalorder %s129_s25, %s234_s1 }
  0x16   :  { %p135_p10 = pnand %p133_p9, %p130_p8 }
  0x18   :  { %138 = shalt.err (!%p135_p10)
}
  0x19   :  { %s139_s30 = scalar_lea.vmem %s27_s12, 256  ;;  %p144_p12 = scmp.lt.s32.totalorder %s27_s12, %s27_s12 }
  0x1a   :  { %p140_p11 = scmp.ne.s32.totalorder %s27_s12, %s139_s30  ;;  %p145_p13 = scmp.lt.s32.totalorder %s139_s30, %s139_s30 }
  0x1c   :  { %p146_p0 = por %p145_p13, %p144_p12 }
  0x1e   :  { %p147_p1 = pnand %p146_p0, %p140_p11 }
  0x20   :  { %150 = shalt.err (!%p147_p1)
}
  0x21   :  { %29 = dma.hbm_to_vmem [thread:$0]  %s234_s1, 256, %s27_s12, [#allocation6]  }
  0x22   :  { %173 = dma.done.wait [#allocation3], 256  }
  0x23   :  { %174 = vsyncadd [#allocation3], 4294967040 }
  0x24   :  { %175 = dma.done.wait [#allocation6], 256  }
  0x25   :  { %176 = vsyncadd [#allocation6], 4294967040  ;;  %v36_v0 = vld [vmem:[#allocation2] sm:$0xff]  ;;  %v37_v1 = vld [vmem:[#allocation2 + $0x8] sm:$0xff]  ;;  %s181_s1 = smov [#allocation7]  }
  0x26   :  { %99 = vlog2.f32 %v36_v0  ;;  %v46_v2 = vsub.f32 0.0, %v36_v0  ;;  %v47_v3 = vsub.f32 0.0, %v37_v1  ;;  %v38_v16 = vld [vmem:[#allocation5] sm:$0xff]  ;;  %v39_v20 = vld [vmem:[#allocation5 + $0x8] sm:$0xff]  ;;  %s86_s4 = sshll.u32 %s181_s1, 4  ;;  %s87_s4 = int_to_ptr.vmem [resolvable:$true] %s86_s4 }
  0x27   :  { %101 = vlog2.f32 %v37_v1  ;;  %v70_v25 = vsub.f32 1.0, %v38_v16  ;;  %v71_v28 = vsub.f32 1.0, %v39_v20  ;;  %s151_s5 = scalar_lea.vmem %s87_s4, 256  ;;  %p156_p3 = scmp.lt.s32.totalorder %s87_s4, %s87_s4 }
  0x28   :  { %v48_v4 = vadd.f32 1.0, %v46_v2  ;;  %v57_v5 = vadd.f32 1.0, %v47_v3  ;;  %v51_v6 = vmul.f32 -0.5, %v46_v2  ;;  %v60_v7 = vmul.f32 -0.5, %v47_v3  ;;  %p152_p2 = scmp.ne.s32.totalorder %s87_s4, %s151_s5  ;;  %p157_p4 = scmp.lt.s32.totalorder %s151_s5, %s151_s5 }
  0x29   :  { %v54_v10 = vand.u32 2147483647, %v46_v2  ;;  %v63_v14 = vand.u32 2147483647, %v47_v3 }
  0x2a   :  { %103 = vlog2.f32 %v48_v4  ;;  %v52_v8 = vadd.f32 1.0, %v51_v6  ;;  %v61_v11 = vadd.f32 1.0, %v60_v7  ;;  %p158_p5 = por %p157_p4, %p156_p3 }
  0x2b   :  { %105 = vlog2.f32 %v57_v5  ;;  %vm55_vm0 = vcmp.lt.f32.partialorder %v54_v10, 0.0004427343  ;;  %vm64_vm1 = vcmp.lt.f32.partialorder %v63_v14, 0.0004427343 }
  0x2c   :  { %v53_v17 = vmul.f32 %v52_v8, %v46_v2  ;;  %v62_v21 = vmul.f32 %v61_v11, %v47_v3  ;;  %p159_p6 = pnand %p158_p5, %p152_p2 }
  0x30   :  { %v100_v9 = vpop.eup %99 }
  0x31   :  { %v102_v12 = vpop.eup %101  ;;  %v41_v13 = vmul.f32 0.6931472, %v100_v9 }
  0x32   :  { %v43_v15 = vmul.f32 0.6931472, %v102_v12 }
  0x33   :  { %v44_v19 = vmax.f32 %v41_v13, -100.0 }
  0x34   :  { %v104_v18 = vpop.eup %103  ;;  %v45_v24 = vmax.f32 %v43_v15, -100.0 }
  0x35   :  { %v106_v22 = vpop.eup %105  ;;  %v50_v23 = vmul.f32 0.6931472, %v104_v18  ;;  %v68_v30 = vmul.f32 %v44_v19, %v38_v16 }
  0x36   :  { %v59_v26 = vmul.f32 0.6931472, %v106_v22  ;;  %v69_v33 = vmul.f32 %v45_v24, %v39_v20 }
  0x37   :  { %v56_v27 = vsel %vm55_vm0, %v53_v17, %v50_v23 }
  0x38   :  { %v66_v29 = vmax.f32 %v56_v27, -100.0  ;;  %v65_v31 = vsel %vm64_vm1, %v62_v21, %v59_v26 }
  0x39   :  { %v67_v32 = vmax.f32 %v65_v31, -100.0 }
  0x3a   :  { %v72_v34 = vmul.f32 %v70_v25, %v66_v29 }
  0x3b   :  { %v73_v35 = vmul.f32 %v71_v28, %v67_v32 }
  0x3c   :  { %v74_v36 = vadd.f32 %v72_v34, %v68_v30 }
  0x3d   :  { %v75_v37 = vadd.f32 %v73_v35, %v69_v33 }
  0x3e   :  { %v76_v38 = vsub.f32 0.0, %v74_v36 }
  0x3f   :  { %v77_v39 = vsub.f32 0.0, %v75_v37 }
  0x40   :  { %78 = vst [vmem:[#allocation7] sm:$0xff] %v76_v38 }
  0x41   :  { %79 = vst [vmem:[#allocation7 + $0x8] sm:$0xff] %v77_v39 }
  0x42   :  { %162 = shalt.err (!%p159_p6)
}
  0x43   :  { %s163_s8 = scalar_lea.hbm %s235_s2, 256 }
  0x44   :  { %p164_p7 = scmp.ne.s32.totalorder %s235_s2, %s163_s8  ;;  %p167_p8 = scmp.lt.u32.totalorder %s163_s8, %s235_s2 }
  0x46   :  { %p169_p9 = pnand %p167_p8, %p164_p7 }
  0x48   :  { %172 = shalt.err (!%p169_p9)
}
  0x49   :  { %89 = dma.vmem_to_hbm [thread:$0]  %s87_s4, 256, %s235_s2, [#allocation4]  }
  0x4a   :  { %177 = dma.done.wait [#allocation4], 256  }
  0x4b   :  { %178 = vsyncadd [#allocation4], 4294967040 }
  0x4c   :  { %93 = vsyncpa [#allocation3], 1 }
  0x4d   :  { %94 = vsyncpa [#allocation6], 1 }
  0x4e   :  { %95 = vsyncpa [#allocation4], 1 }

</bundles_post_ra>
